<compile_context>
chip_gen: v7x
topology: tpu7x:2x2x1
jax: 0.10.0
libtpu: 0.0.40
codegen_flags: <defaults>
</compile_context>

<pallas_src>
import functools

import jax
import jax.numpy as jnp
from jax import lax
from jax.experimental import pallas as pl
from jax.experimental.pallas import tpu as pltpu


def _round_up(x: int, m: int) -> int:
    return ((x + m - 1) // m) * m


# ---------------------------------------------------------------------------
# Kernels
# ---------------------------------------------------------------------------
def _linear_kernel_acc(x_ref, w_ref, b_ref, o_ref, acc_ref, *, compute_dtype):
    """Multi-K-step tile: grid=(M/tm, N/tn, K/tk), f32 accumulator resident
    across the (arbitrary) K axis.  Bias is folded into the k==0 init."""
    k = pl.program_id(2)

    @pl.when(k == 0)
    def _():
        acc_ref[...] = jnp.broadcast_to(
            b_ref[...].astype(jnp.float32), acc_ref.shape)

    # Weight tile is in native (N, K) layout; contract the last dims of both
    # operands (x @ W^T) directly on the MXU -- no transpose copy.
    acc_ref[...] += lax.dot_general(
        x_ref[...].astype(compute_dtype),
        w_ref[...].astype(compute_dtype),
        (((1,), (1,)), ((), ())),
        preferred_element_type=jnp.float32,
    )

    @pl.when(k == pl.num_programs(2) - 1)
    def _():
        o_ref[...] = acc_ref[...].astype(o_ref.dtype)


def _linear_kernel_single_k(x_ref, w_ref, b_ref, o_ref, *, compute_dtype):
    """Single-K-step tile: no scratch round trip."""
    acc = lax.dot_general(
        x_ref[...].astype(compute_dtype),
        w_ref[...].astype(compute_dtype),
        (((1,), (1,)), ((), ())),
        preferred_element_type=jnp.float32,
    )
    acc += b_ref[...].astype(jnp.float32)
    o_ref[...] = acc.astype(o_ref.dtype)


# ---------------------------------------------------------------------------
# Wrapper
# ---------------------------------------------------------------------------
@functools.partial(jax.jit, static_argnames=("mxu_bf16", "allow_fast_path"))
def meta_linear(x, weight, bias=None, *, mxu_bf16=True, allow_fast_path=True):
    """y = x @ weight.T + bias, matching torch.nn.functional.linear.

    x:      (..., in_features)
    weight: (out_features, in_features)   -- PyTorch nn.Linear convention
    bias:   (out_features,) or None
    """
    orig_shape = x.shape
    k = orig_shape[-1]
    n, k2 = weight.shape
    assert k == k2, "in_features mismatch"

    if bias is None:
        bias = jnp.zeros((n,), dtype=x.dtype)

    x2 = x.reshape(-1, k)
    m = x2.shape[0]
    out_dtype = x.dtype

    # Tiny layers: per-grid-step overhead + padding HLO dwarf the matmul.
    if allow_fast_path and (m * n * k) <= (64 * 64 * 64):
        y = jnp.dot(x2, weight.T, preferred_element_type=jnp.float32)
        y = (y + bias.astype(jnp.float32)).astype(out_dtype)
        return y.reshape(*orig_shape[:-1], n)

    compute_dtype = (
        jnp.bfloat16 if (mxu_bf16 and x.dtype == jnp.float32) else x.dtype)

    # ---- tile sizing (static, shape-derived) ------------------------------
    # Block dims must be multiples of (8, 128) or equal the full array dim.
    # M/N use cdiv grids with masked edge stores; only K is zero-padded.
    tm = m if m <= 512 else 512
    tn = n if n <= 512 else 512

    kp = _round_up(k, 128)
    if kp <= 1024:
        tk = kp
    else:
        tk = 128
        for cand in range(1024, 127, -128):   # largest 128-multiple <= 1024
            if kp % cand == 0:                # that divides padded K
                tk = cand
                break

    gm = pl.cdiv(m, tm)
    gn = pl.cdiv(n, tn)
    gk = kp // tk

    # v7x shards parallel grid axes over 2 TensorCores: make sure the (i, j)
    # grid has >= 2 tiles when N can be split lane-aligned.
    if gm * gn == 1 and n >= 256 and n % 256 == 0:
        tn = n // 2
        gn = 2

    # ---- host-side prep: zero-pad only the contraction dim ----------------
    if kp != k:
        x2 = jnp.pad(x2, ((0, 0), (0, kp - k)))
        weight = jnp.pad(weight, ((0, 0), (0, kp - k)))
    bias2d = bias.reshape(1, n)

    # ---- advisory cost (includes re-fetch of x per N-tile, W per M-tile) --
    in_bytes = jnp.dtype(x2.dtype).itemsize
    w_bytes = jnp.dtype(weight.dtype).itemsize
    cost = pl.CostEstimate(
        flops=2 * m * n * kp,
        transcendentals=0,
        bytes_accessed=(
            m * kp * in_bytes * gn
            + n * kp * w_bytes * gm
            + n * jnp.dtype(bias.dtype).itemsize
            + m * n * jnp.dtype(out_dtype).itemsize
        ),
    )

    in_specs = [
        pl.BlockSpec((tm, tk), lambda i, j, kk: (i, kk)),   # x tile
        pl.BlockSpec((tn, tk), lambda i, j, kk: (j, kk)),   # W tile (native N,K)
        pl.BlockSpec((1, tn), lambda i, j, kk: (0, j)),     # bias tile
    ]
    out_spec = pl.BlockSpec((tm, tn), lambda i, j, kk: (i, j))

    if gk == 1:
        kernel = functools.partial(
            _linear_kernel_single_k, compute_dtype=compute_dtype)
        scratch = []
    else:
        kernel = functools.partial(
            _linear_kernel_acc, compute_dtype=compute_dtype)
        scratch = [pltpu.VMEM((tm, tn), jnp.float32)]

    y = pl.pallas_call(
        kernel,
        out_shape=jax.ShapeDtypeStruct((m, n), out_dtype),
        grid_spec=pltpu.PrefetchScalarGridSpec(
            num_scalar_prefetch=0,
            grid=(gm, gn, gk),
            in_specs=in_specs,
            out_specs=out_spec,
            scratch_shapes=scratch,
        ),
        compiler_params=pltpu.CompilerParams(
            dimension_semantics=("parallel", "parallel", "arbitrary"),
            vmem_limit_bytes=64 * 1024 * 1024,
        ),
        cost_estimate=cost,
    )(x2, weight, bias2d)

    return y.reshape(*orig_shape[:-1], n)


if __name__ == "__main__":
    key = jax.random.PRNGKey(0)
    kx, kw, kb, kx2, kw2, kb2, kx3, kw3, kb3 = jax.random.split(key, 9)

    # --- Small shape consistent with MetaLinear(32, 16): x of shape (2, 4, 32)
    in_features, out_features = 32, 16
    bound = 1.0 / (in_features ** 0.5)
    x = jax.random.normal(kx, (2, 4, in_features), dtype=jnp.float32)
    w = jax.random.uniform(kw, (out_features, in_features),
                           minval=-bound, maxval=bound, dtype=jnp.float32)
    b = jax.random.uniform(kb, (out_features,),
                           minval=-bound, maxval=bound, dtype=jnp.float32)

    y_ref = jnp.einsum("bsk,nk->bsn", x, w, precision="highest") + b

    # Exercise the Pallas kernel itself at the module's small shape (f32 path).
    y = jax.block_until_ready(
        meta_linear(x, w, b, mxu_bf16=False, allow_fast_path=False))
    assert y.shape == (2, 4, out_features)
    assert jnp.allclose(y, y_ref, atol=2e-2, rtol=2e-2), "small f32 mismatch"

    # Default path for tiny shapes (plain-JAX fast path) must agree too.
    y_fast = jax.block_until_ready(meta_linear(x, w, b))
    assert jnp.allclose(y_fast, y_ref, atol=2e-2, rtol=2e-2)

    # --- Larger multi-K-step shape with ragged M/N (edge-block masking),
    #     bf16 MXU operands with f32 accumulation.
    M2, K2, N2 = 1000, 2048, 1500
    x2 = jax.random.normal(kx2, (M2, K2), dtype=jnp.float32)
    w2 = jax.random.normal(kw2, (N2, K2), dtype=jnp.float32) * 0.02
    b2 = jax.random.normal(kb2, (N2,), dtype=jnp.float32)
    y2 = jax.block_until_ready(meta_linear(x2, w2, b2))
    y2_ref = jnp.dot(x2.astype(jnp.bfloat16), w2.astype(jnp.bfloat16).T,
                     preferred_element_type=jnp.float32) + b2
    assert y2.shape == (M2, N2)
    assert jnp.allclose(y2, y2_ref, atol=2e-2, rtol=2e-2), "large bf16 mismatch"

    # --- K not a multiple of 128 (exercises minimal K zero-pad) and a
    #     single-K-step grid, f32 path.
    M3, K3, N3 = 300, 320, 272
    x3 = jax.random.normal(kx3, (M3, K3), dtype=jnp.float32)
    w3 = jax.random.normal(kw3, (N3, K3), dtype=jnp.float32) * 0.05
    b3 = jax.random.normal(kb3, (N3,), dtype=jnp.float32)
    y3 = jax.block_until_ready(
        meta_linear(x3, w3, b3, mxu_bf16=False, allow_fast_path=False))
    y3_ref = jnp.einsum("mk,nk->mn", x3, w3, precision="highest") + b3
    assert jnp.allclose(y3, y3_ref, atol=2e-2, rtol=2e-2), "ragged f32 mismatch"

    print("KERNEL_OK")
</pallas_src>

<mosaic_0001>
module attributes {stable_mosaic.version = 11 : i64} {
  func.func @_linear_kernel_single_k(%arg0: i32, %arg1: i32, %arg2: i32, %arg3: memref<8x128xf32, #tpu.memory_space<vmem>>, %arg4: memref<16x128xf32, #tpu.memory_space<vmem>>, %arg5: memref<1x16xf32, #tpu.memory_space<vmem>>, %arg6: memref<8x16xf32, #tpu.memory_space<vmem>>) attributes {dimension_semantics = [#tpu.dimension_semantics<parallel>, #tpu.dimension_semantics<parallel>, #tpu.dimension_semantics<arbitrary>], iteration_bounds = array<i64: 1, 1, 1>, scalar_prefetch = 0 : i64, scratch_operands = 0 : i64, tpu.core_type = #tpu.core_type<tc>, window_params = [{transform_indices = @transform_0, window_bounds = array<i64: 8, 128>}, {transform_indices = @transform_1, window_bounds = array<i64: 16, 128>}, {transform_indices = @transform_2, window_bounds = array<i64: 1, 16>}, {transform_indices = @transform_3, window_bounds = array<i64: 8, 16>}]} {
    %c0 = arith.constant 0 : index
    %c0_0 = arith.constant 0 : index
    %0 = vector.load %arg3[%c0, %c0_0] : memref<8x128xf32, #tpu.memory_space<vmem>>, vector<8x128xf32>
    %c0_1 = arith.constant 0 : index
    %c0_2 = arith.constant 0 : index
    %1 = vector.load %arg4[%c0_1, %c0_2] : memref<16x128xf32, #tpu.memory_space<vmem>>, vector<16x128xf32>
    %cst = arith.constant dense<0.000000e+00> : vector<8x16xf32>
    %2 = tpu.matmul %0, %1, %cst {dimension_numbers = #tpu.dot_dimension_numbers<[1], [1], [0], [0], [0, 0, 1, 0], [], []>} : vector<8x128xf32>, vector<16x128xf32>, vector<8x16xf32> -> vector<8x16xf32>
    %c0_3 = arith.constant 0 : index
    %c0_4 = arith.constant 0 : index
    %3 = vector.load %arg5[%c0_3, %c0_4] : memref<1x16xf32, #tpu.memory_space<vmem>>, vector<1x16xf32>
    %4 = vector.broadcast %3 : vector<1x16xf32> to vector<8x16xf32>
    %5 = arith.addf %2, %4 : vector<8x16xf32>
    %c0_5 = arith.constant 0 : index
    %c0_6 = arith.constant 0 : index
    %6 = vector.load %arg6[%c0_5, %c0_6] : memref<8x16xf32, #tpu.memory_space<vmem>>, vector<8x16xf32>
    tpu.vector_store %arg6[%c0_5, %c0_6], %5 {strides = array<i32>} : memref<8x16xf32, #tpu.memory_space<vmem>>, vector<8x16xf32>,
    return
  }
  func.func @transform_0(%arg0: i32, %arg1: i32, %arg2: i32) -> (i32, i32) {
    %c0_i32 = arith.constant 0 : i32
    return %arg0, %arg2 : i32, i32
  }
  func.func @transform_1(%arg0: i32, %arg1: i32, %arg2: i32) -> (i32, i32) {
    %c0_i32 = arith.constant 0 : i32
    return %arg1, %arg2 : i32, i32
  }
  func.func @transform_2(%arg0: i32, %arg1: i32, %arg2: i32) -> (i32, i32) {
    %c0_i32 = arith.constant 0 : i32
    %c0_i32_0 = arith.constant 0 : i32
    return %c0_i32, %arg1 : i32, i32
  }
  func.func @transform_3(%arg0: i32, %arg1: i32, %arg2: i32) -> (i32, i32) {
    %c0_i32 = arith.constant 0 : i32
    return %arg0, %arg1 : i32, i32
  }
}

</mosaic_0001>

<bundles_post_ra>
// kernel: meta_linear.1
= control target key start
LH: loop header
LB: loop body
LE: loop exit
PB: predicated region body
PF: predicated region fallthrough
CT: control target
= control target key end

     0   :  { %8 = vsyncpa [#allocation3], 0  ;;  %s344_s0 = inlined_call_operand.hbm [shape: f32[8,128], index: 0, kind: input, shape index: {}]   ;;  %s345_s1 = inlined_call_operand.hbm [shape: f32[16,128], index: 1, kind: input, shape index: {}]   ;;  %s346_s2 = inlined_call_operand.hbm [shape: f32[1,16], index: 2, kind: input, shape index: {}]   ;;  %s347_s3 = inlined_call_operand.hbm [shape: f32[8,16], index: 3, kind: output, shape index: {}]  }
   0x1   :  { %9 = vsyncpa [#allocation6], 0 }
   0x2   :  { %10 = vsyncpa [#allocation4], 0  ;;  %s267_s12 = smov [#allocation5]   ;;  %s173_s16 = scalar_lea.hbm %s345_s1, 256 }
   0x3   :  { %s26_s13 = sshll.u32 %s267_s12, 4  ;;  %p174_p0 = scmp.ne.s32.totalorder %s345_s1, %s173_s16  ;;  %s27_s13 = int_to_ptr.vmem [resolvable:$true] %s26_s13 }
   0x4   :  { %p177_p1 = scmp.lt.u32.totalorder %s173_s16, %s345_s1 }
   0x6   :  { %p179_p2 = pnand %p177_p1, %p174_p0 }
   0x8   :  { %182 = shalt.err (!%p179_p2)
}
   0x9   :  { %s183_s21 = scalar_lea.vmem %s27_s13, 256  ;;  %p188_p4 = scmp.lt.s32.totalorder %s27_s13, %s27_s13 }
   0xa   :  { %p184_p3 = scmp.ne.s32.totalorder %s27_s13, %s183_s21  ;;  %p189_p5 = scmp.lt.s32.totalorder %s183_s21, %s183_s21 }
   0xc   :  { %p190_p6 = por %p189_p5, %p188_p4 }
   0xe   :  { %p191_p7 = pnand %p190_p6, %p184_p3 }
  0x10   :  { %194 = shalt.err (!%p191_p7)
}
  0x11   :  { %s268_s22 = smov 128   ;;  %s269_s23 = smov 8  }
  0x12   :  { %32 = dma.hbm_to_vmem [thread:$0]  %s345_s1, 256, %s27_s13, [#allocation6], %s268_s22, %s268_s22, %s269_s23  }
  0x13   :  { %s270_s26 = smov [#allocation2]   ;;  %s271_s28 = smov [#allocation7]  }
  0x14   :  { %s17_s27 = sshll.u32 %s270_s26, 4  ;;  %s39_s29 = sshll.u32 %s271_s28, 4  ;;  %s18_s27 = int_to_ptr.vmem [resolvable:$true] %s17_s27  ;;  %s40_s29 = int_to_ptr.vmem [resolvable:$true] %s39_s29 }
  0x15   :  { %s195_s5 = scalar_lea.hbm %s344_s0, 128 }
  0x16   :  { %p196_p8 = scmp.ne.s32.totalorder %s344_s0, %s195_s5  ;;  %p199_p9 = scmp.lt.u32.totalorder %s195_s5, %s344_s0 }
  0x18   :  { %p201_p10 = pnand %p199_p9, %p196_p8 }
  0x1a   :  { %204 = shalt.err (!%p201_p10)
}
  0x1b   :  { %s205_s1 = scalar_lea.vmem %s18_s27, 128  ;;  %p210_p12 = scmp.lt.s32.totalorder %s18_s27, %s18_s27 }
  0x1c   :  { %p206_p11 = scmp.ne.s32.totalorder %s18_s27, %s205_s1  ;;  %p211_p13 = scmp.lt.s32.totalorder %s205_s1, %s205_s1 }
  0x1e   :  { %p212_p0 = por %p211_p13, %p210_p12 }
  0x20   :  { %p213_p1 = pnand %p212_p0, %p206_p11 }
  0x22   :  { %216 = shalt.err (!%p213_p1)
}
  0x23   :  { %20 = dma.hbm_to_vmem [thread:$0]  %s344_s0, 128, %s18_s27, [#allocation3]  }
  0x24   :  { %s217_s14 = scalar_lea.hbm %s346_s2, 16 }
  0x25   :  { %p218_p2 = scmp.ne.s32.totalorder %s346_s2, %s217_s14  ;;  %p221_p3 = scmp.lt.u32.totalorder %s217_s14, %s346_s2 }
  0x27   :  { %p223_p4 = pnand %p221_p3, %p218_p2 }
  0x29   :  { %226 = shalt.err (!%p223_p4)
}
  0x2a   :  { %s227_s19 = scalar_lea.vmem %s40_s29, 16  ;;  %s231_s20 = scalar_lea.vmem %s40_s29, 32 }
  0x2b   :  { %p228_p5 = scmp.ne.s32.totalorder %s40_s29, %s227_s19  ;;  %p232_p6 = scmp.lt.s32.totalorder %s40_s29, %s40_s29 }
  0x2c   :  { %p233_p7 = scmp.lt.s32.totalorder %s231_s20, %s227_s19 }
  0x2e   :  { %p234_p8 = por %p233_p7, %p232_p6 }
  0x30   :  { %p235_p9 = pnand %p234_p8, %p228_p5 }
  0x32   :  { %238 = shalt.err (!%p235_p9)
}
  0x33   :  { %42 = dma.hbm_to_vmem [thread:$0]  %s346_s2, 16, %s40_s29, [#allocation6]  }
  0x34   :  { %261 = dma.done.wait [#allocation3], 128  }
  0x35   :  { %262 = vsyncadd [#allocation3], 4294967168 }
  0x36   :  { %263 = dma.done.wait [#allocation6], 272  }
  0x37   :  { %264 = vsyncadd [#allocation6], 4294967024  ;;  %v272_v0 = vmov 0.0|0.0   ;;  %vm273_vm0 = vmmov 0   ;;  %v274_v1 = vmov 0.0   ;;  %v53_v2 = vld [vmem:[#allocation5] sm:$0xff] }
  0x38   :  { %161 = vmatprep.subr.bf16.mxu0 %v272_v0  ;;  %158 = vmatprep.mubr.msk.f32.mxu0 %vm273_vm0, %v274_v1  ;;  %v54_v3 = vld [vmem:[#allocation5 + $0x8] sm:$0xff]  ;;  %v52_v5 = vld [vmem:[#allocation2] sm:$0xff]  ;;  %v150_v6 = vld [vmem:[#allocation7] ss:$0 sm:$0xff]  ;;  %s275_s22 = smov [#allocation8]   ;;  %vm132_vm1 = vcmask 130048  }
  0x39   :  { %v162_v4 = vpack.c.bf16 %v54_v3, %v53_v2  ;;  %s140_s23 = sshll.u32 %s275_s22, 4  ;;  %s141_s23 = int_to_ptr.vmem [resolvable:$true] %s140_s23 }
  0x3a   :  { %s239_s2 = scalar_lea.vmem %s141_s23, 128  ;;  %p244_p11 = scmp.lt.s32.totalorder %s141_s23, %s141_s23 }
  0x3b   :  { %163 = vmatpush3.bf16.xpose.msra.mxu0 %v162_v4  ;;  %p240_p10 = scmp.ne.s32.totalorder %s141_s23, %s239_s2  ;;  %p245_p12 = scmp.lt.s32.totalorder %s239_s2, %s239_s2 }
  0x3d   :  { %p246_p13 = por %p245_p12, %p244_p11 }
  0x3f   :  { %p247_p0 = pnand %p246_p13, %p240_p10 }
  0x42   :  { %159 = vmatmul.mubr.f32.vlgmr.msra.gmra.mrb[0].mxu0 %v52_v5 }
 0x115   :  { %v128_v7 = vpop.f32.mrb[0].mxu0 }
 0x116   :  { %v129_v8 = vadd.f32 %v150_v6, %v128_v7  ;;  %v160_v9 = vpop.f32.mrb[1].mxu0 }
 0x118   :  { %133 = vst.msk [vmem:[#allocation8] sm:$0xff] %vm132_vm1, %v129_v8 }
 0x119   :  { %250 = shalt.err (!%p247_p0)
}
 0x11a   :  { %s251_s26 = scalar_lea.hbm %s347_s3, 128 }
 0x11b   :  { %p252_p1 = scmp.ne.s32.totalorder %s347_s3, %s251_s26  ;;  %p255_p2 = scmp.lt.u32.totalorder %s251_s26, %s347_s3 }
 0x11d   :  { %p257_p3 = pnand %p255_p2, %p252_p1 }
 0x11f   :  { %260 = shalt.err (!%p257_p3)
}
 0x120   :  { %143 = dma.vmem_to_hbm [thread:$0]  %s141_s23, 128, %s347_s3, [#allocation4]  }
 0x121   :  { %265 = dma.done.wait [#allocation4], 128  }
 0x122   :  { %266 = vsyncadd [#allocation4], 4294967168 }
 0x123   :  { %147 = vsyncpa [#allocation3], 1 }
 0x124   :  { %148 = vsyncpa [#allocation6], 1 }
 0x125   :  { %149 = vsyncpa [#allocation4], 1 }

</bundles_post_ra>
